<compile_context>
chip_gen: v7x
topology: tpu7x:2x2x1
jax: 0.10.0
libtpu: 0.0.40
codegen_flags: <defaults>
</compile_context>

<pallas_src>
import functools

import jax
import jax.numpy as jnp
from jax import lax
from jax.experimental import pallas as pl
from jax.experimental.pallas import tpu as pltpu


def _round_up(x, m):
    return ((x + m - 1) // m) * m


def mlp_kernel(x_ref, keep_ref, w1_ref, b1_ref, w2_ref, b2_ref, out_ref,
               acc_ref, *, seq_len, seq_pad, tile_b, tile_s):
    """One (batch-tile, seq-tile) grid step.

    x_ref   : (tB, tS, Dp)  input rows
    keep_ref: (tB, tS, 1)   1.0 = keep, 0.0 = masked  (PyTorch `~mask`)
    w1_ref  : (Dp, Hp)   b1_ref: (1, Hp)
    w2_ref  : (Hp, Op)   b2_ref: (1, Op)
    out_ref : (tB, Op)      written on the last seq step only
    acc_ref : (tB, Hp) f32  running sum of relu(fc1(x*keep)) over the sequence
    """
    k = pl.program_id(1)

    @pl.when(k == 0)
    def _init():
        acc_ref[...] = jnp.zeros_like(acc_ref)

    dp = x_ref.shape[-1]
    hp = w1_ref.shape[-1]

    # mask -> x * ~mask  (free VPU work under the MXU / DMA)
    xm = x_ref[...] * keep_ref[...]                            # (tB, tS, Dp)

    # fc1 on the MXU with f32 accumulation. tile_s % 8 == 0 and Dp/Hp % 128
    # == 0, so these leading-dim reshapes are tile-aligned (no VMEM relayout).
    h = jnp.dot(xm.reshape(tile_b * tile_s, dp), w1_ref[...],
                preferred_element_type=jnp.float32)            # (tB*tS, Hp)
    h = jnp.maximum(h + b1_ref[...], 0.0)
    h = h.reshape(tile_b, tile_s, hp)

    if seq_pad != seq_len:
        # Zero contributions of rows that only exist because S was padded
        # (they would otherwise contribute relu(b1) to the mean).
        row = k * tile_s + lax.broadcasted_iota(jnp.int32, (1, tile_s, 1), 1)
        h = h * (row < seq_len).astype(jnp.float32)

    acc_ref[...] += jnp.sum(h, axis=1)                         # (tB, Hp)

    @pl.when(k == pl.num_programs(1) - 1)
    def _finalize():
        m = acc_ref[...] * (1.0 / seq_len)                     # mean over true S
        out = jnp.dot(m, w2_ref[...],
                      preferred_element_type=jnp.float32) + b2_ref[...]
        out_ref[...] = out.astype(out_ref.dtype)


def mlp_forward(x, mask, w1, b1, w2, b2, *, tile_s_max=512, tile_b_max=8):
    """x: (B, S, D) f32; mask: (B, S) bool, True = masked (as in the module)."""
    B, S, D = x.shape
    H = w1.shape[1]
    O = w2.shape[1]

    # Lane-dense padding of the contraction / hidden / output dims.
    Dp = _round_up(D, 128)
    Hp = _round_up(H, 128)
    Op = _round_up(O, 128)

    # Batch tile; sequence tile sized against a ~8 MiB working set so the
    # double-buffered pipeline fits scoped VMEM on v5e / v6e / v7x alike.
    tB = B if B <= tile_b_max else tile_b_max
    Bp = _round_up(B, tB)
    vmem_budget = 8 * 1024 * 1024
    ts_cap = max(8, (vmem_budget // (tB * (Dp + Hp) * 4)) // 8 * 8)
    tS = max(8, min(_round_up(S, 8), tile_s_max, ts_cap))
    Sp = _round_up(S, tS)

    f32 = jnp.float32
    xp = jnp.zeros((Bp, Sp, Dp), f32).at[:B, :S, :D].set(x.astype(f32))
    keep = jnp.zeros((Bp, Sp, 1), f32).at[:B, :S, 0].set(1.0 - mask.astype(f32))
    w1p = jnp.zeros((Dp, Hp), f32).at[:D, :H].set(w1.astype(f32))
    b1p = jnp.zeros((1, Hp), f32).at[0, :H].set(b1.astype(f32))
    w2p = jnp.zeros((Hp, Op), f32).at[:H, :O].set(w2.astype(f32))
    b2p = jnp.zeros((1, Op), f32).at[0, :O].set(b2.astype(f32))

    grid = (Bp // tB, Sp // tS)
    kernel = functools.partial(mlp_kernel, seq_len=S, seq_pad=Sp,
                               tile_b=tB, tile_s=tS)

    flops = 2 * Bp * Sp * Dp * Hp + 2 * Bp * Hp * Op
    bytes_accessed = 4 * (xp.size + keep.size + w1p.size + b1p.size
                          + w2p.size + b2p.size + Bp * Op)

    out = pl.pallas_call(
        kernel,
        out_shape=jax.ShapeDtypeStruct((Bp, Op), f32),
        grid_spec=pltpu.PrefetchScalarGridSpec(
            num_scalar_prefetch=0,
            grid=grid,
            in_specs=[
                pl.BlockSpec((tB, tS, Dp), lambda i, k: (i, k, 0)),  # x
                pl.BlockSpec((tB, tS, 1), lambda i, k: (i, k, 0)),   # keep
                pl.BlockSpec((Dp, Hp), lambda i, k: (0, 0)),         # w1 (resident)
                pl.BlockSpec((1, Hp), lambda i, k: (0, 0)),          # b1 (resident)
                pl.BlockSpec((Hp, Op), lambda i, k: (0, 0)),         # w2 (resident)
                pl.BlockSpec((1, Op), lambda i, k: (0, 0)),          # b2 (resident)
            ],
            out_specs=pl.BlockSpec((tB, Op), lambda i, k: (i, 0)),
            scratch_shapes=[pltpu.VMEM((tB, Hp), jnp.float32)],
        ),
        compiler_params=pltpu.CompilerParams(
            dimension_semantics=("parallel", "arbitrary"),
            vmem_limit_bytes=32 * 1024 * 1024,
        ),
        cost_estimate=pl.CostEstimate(
            flops=flops, transcendentals=0, bytes_accessed=bytes_accessed),
    )(xp, keep, w1p, b1p, w2p, b2p)

    return out[:B, :O]


def init_params(key, input_dim, hidden_dim, output_dim):
    # Deterministic init mirroring nn.Linear's U(-1/sqrt(fan_in), 1/sqrt(fan_in))
    k1, k2, k3, k4 = jax.random.split(key, 4)
    bound1 = 1.0 / (input_dim ** 0.5)
    w1 = jax.random.uniform(k1, (input_dim, hidden_dim), jnp.float32, -bound1, bound1)
    b1 = jax.random.uniform(k2, (hidden_dim,), jnp.float32, -bound1, bound1)
    bound2 = 1.0 / (hidden_dim ** 0.5)
    w2 = jax.random.uniform(k3, (hidden_dim, output_dim), jnp.float32, -bound2, bound2)
    b2 = jax.random.uniform(k4, (output_dim,), jnp.float32, -bound2, bound2)
    return w1, b1, w2, b2


def reference_forward(x, mask, w1, b1, w2, b2):
    xm = x * (1.0 - mask.astype(jnp.float32)[:, :, None])
    h = jnp.maximum(xm @ w1 + b1, 0.0)
    m = jnp.mean(h, axis=1)
    return m @ w2 + b2


if __name__ == "__main__":
    key = jax.random.PRNGKey(0)

    def run_case(B, S, D, H, O, **kw):
        kx, km, kp = jax.random.split(jax.random.fold_in(key, B * 1000 + S), 3)
        x = jax.random.normal(kx, (B, S, D), dtype=jnp.float32)
        mask = jax.random.bernoulli(km, p=0.3, shape=(B, S))   # True = masked
        w1, b1, w2, b2 = init_params(kp, D, H, O)
        out = jax.block_until_ready(mlp_forward(x, mask, w1, b1, w2, b2, **kw))
        ref = reference_forward(x, mask, w1, b1, w2, b2)
        assert out.shape == (B, O)
        err = jnp.max(jnp.abs(out - ref))
        assert jnp.allclose(out, ref, atol=1e-5, rtol=1e-5), f"max abs err {err}"

    # Small shapes consistent with the module.
    run_case(2, 8, 16, 32, 8)                    # aligned tiles, single seq step
    run_case(3, 10, 16, 32, 8)                   # seq padding (10 -> 16) path
    run_case(2, 24, 16, 32, 8, tile_s_max=8)     # multi-step seq accumulation

    print("KERNEL_OK")
</pallas_src>

<mosaic_0001>
module attributes {stable_mosaic.version = 11 : i64} {
  func.func @mlp_kernel(%arg0: i32, %arg1: i32, %arg2: memref<2x8x128xf32, #tpu.memory_space<vmem>>, %arg3: memref<2x8x1xf32, #tpu.memory_space<vmem>>, %arg4: memref<128x128xf32, #tpu.memory_space<vmem>>, %arg5: memref<1x128xf32, #tpu.memory_space<vmem>>, %arg6: memref<128x128xf32, #tpu.memory_space<vmem>>, %arg7: memref<1x128xf32, #tpu.memory_space<vmem>>, %arg8: memref<2x128xf32, #tpu.memory_space<vmem>>, %arg9: memref<2x128xf32, #tpu.memory_space<vmem>>) attributes {dimension_semantics = [#tpu.dimension_semantics<parallel>, #tpu.dimension_semantics<arbitrary>], iteration_bounds = array<i64: 1, 1>, scalar_prefetch = 0 : i64, scratch_operands = 1 : i64, tpu.core_type = #tpu.core_type<tc>, window_params = [{transform_indices = @transform_0, window_bounds = array<i64: 2, 8, 128>}, {transform_indices = @transform_1, window_bounds = array<i64: 2, 8, 1>}, {pipeline_mode = #tpu.pipeline_mode<synchronous>, transform_indices = @transform_2, window_bounds = array<i64: 128, 128>}, {pipeline_mode = #tpu.pipeline_mode<synchronous>, transform_indices = @transform_3, window_bounds = array<i64: 1, 128>}, {pipeline_mode = #tpu.pipeline_mode<synchronous>, transform_indices = @transform_4, window_bounds = array<i64: 128, 128>}, {pipeline_mode = #tpu.pipeline_mode<synchronous>, transform_indices = @transform_5, window_bounds = array<i64: 1, 128>}, {transform_indices = @transform_6, window_bounds = array<i64: 2, 128>}]} {
    %c0_i32 = arith.constant 0 : i32
    %0 = arith.cmpi eq, %arg1, %c0_i32 : i32
    %1 = arith.extui %0 : i1 to i32
    %c0_i32_0 = arith.constant 0 : i32
    %2 = arith.cmpi ne, %1, %c0_i32_0 : i32
    scf.if %2 {
      %cst_18 = arith.constant 0.000000e+00 : f32
      %23 = vector.broadcast %cst_18 : f32 to vector<2x128xf32>
      %c0_19 = arith.constant 0 : index
      %c0_20 = arith.constant 0 : index
      %24 = vector.load %arg9[%c0_19, %c0_20] : memref<2x128xf32, #tpu.memory_space<vmem>>, vector<2x128xf32>
      tpu.vector_store %arg9[%c0_19, %c0_20], %23 {strides = array<i32>} : memref<2x128xf32, #tpu.memory_space<vmem>>, vector<2x128xf32>,
    } else {
    }
    %c0 = arith.constant 0 : index
    %c0_1 = arith.constant 0 : index
    %c0_2 = arith.constant 0 : index
    %3 = vector.load %arg2[%c0, %c0_1, %c0_2] : memref<2x8x128xf32, #tpu.memory_space<vmem>>, vector<2x8x128xf32>
    %c0_3 = arith.constant 0 : index
    %c0_4 = arith.constant 0 : index
    %c0_5 = arith.constant 0 : index
    %4 = vector.load %arg3[%c0_3, %c0_4, %c0_5] : memref<2x8x1xf32, #tpu.memory_space<vmem>>, vector<2x8x1xf32>
    %5 = vector.broadcast %4 : vector<2x8x1xf32> to vector<2x8x128xf32>
    %6 = arith.mulf %3, %5 : vector<2x8x128xf32>
    %7 = vector.shape_cast %6 : vector<2x8x128xf32> to vector<16x128xf32>
    %c0_6 = arith.constant 0 : index
    %c0_7 = arith.constant 0 : index
    %8 = vector.load %arg4[%c0_6, %c0_7] : memref<128x128xf32, #tpu.memory_space<vmem>>, vector<128x128xf32>
    %cst = arith.constant dense<0.000000e+00> : vector<16x128xf32>
    %9 = tpu.matmul %7, %8, %cst {dimension_numbers = #tpu.dot_dimension_numbers<[1], [0], [0], [1], [0, 0, 1, 1], [], []>} : vector<16x128xf32>, vector<128x128xf32>, vector<16x128xf32> -> vector<16x128xf32>
    %c0_8 = arith.constant 0 : index
    %c0_9 = arith.constant 0 : index
    %10 = vector.load %arg5[%c0_8, %c0_9] : memref<1x128xf32, #tpu.memory_space<vmem>>, vector<1x128xf32>
    %11 = vector.broadcast %10 : vector<1x128xf32> to vector<16x128xf32>
    %12 = arith.addf %9, %11 : vector<16x128xf32>
    %cst_10 = arith.constant 0.000000e+00 : f32
    %13 = vector.broadcast %cst_10 : f32 to vector<16x128xf32>
    %14 = arith.maximumf %12, %13 : vector<16x128xf32>
    %15 = vector.shape_cast %14 : vector<16x128xf32> to vector<2x8x128xf32>
    %c0_11 = arith.constant 0 : index
    %c0_12 = arith.constant 0 : index
    %16 = vector.load %arg9[%c0_11, %c0_12] : memref<2x128xf32, #tpu.memory_space<vmem>>, vector<2x128xf32>
    %cst_13 = arith.constant dense<0.000000e+00> : vector<2x128xf32>
    %17 = vector.multi_reduction <add>, %15, %cst_13 [1] : vector<2x8x128xf32> to vector<2x128xf32>
    %18 = arith.addf %16, %17 : vector<2x128xf32>
    %c0_14 = arith.constant 0 : index
    %c0_15 = arith.constant 0 : index
    %19 = vector.load %arg9[%c0_14, %c0_15] : memref<2x128xf32, #tpu.memory_space<vmem>>, vector<2x128xf32>
    tpu.vector_store %arg9[%c0_14, %c0_15], %18 {strides = array<i32>} : memref<2x128xf32, #tpu.memory_space<vmem>>, vector<2x128xf32>,
    %c0_i32_16 = arith.constant 0 : i32
    %20 = arith.cmpi eq, %arg1, %c0_i32_16 : i32
    %21 = arith.extui %20 : i1 to i32
    %c0_i32_17 = arith.constant 0 : i32
    %22 = arith.cmpi ne, %21, %c0_i32_17 : i32
    scf.if %22 {
      %c0_18 = arith.constant 0 : index
      %c0_19 = arith.constant 0 : index
      %23 = vector.load %arg9[%c0_18, %c0_19] : memref<2x128xf32, #tpu.memory_space<vmem>>, vector<2x128xf32>
      %cst_20 = arith.constant 1.250000e-01 : f32
      %24 = vector.broadcast %cst_20 : f32 to vector<2x128xf32>
      %25 = arith.mulf %23, %24 : vector<2x128xf32>
      %c0_21 = arith.constant 0 : index
      %c0_22 = arith.constant 0 : index
      %26 = vector.load %arg6[%c0_21, %c0_22] : memref<128x128xf32, #tpu.memory_space<vmem>>, vector<128x128xf32>
      %cst_23 = arith.constant dense<0.000000e+00> : vector<2x128xf32>
      %27 = tpu.matmul %25, %26, %cst_23 {dimension_numbers = #tpu.dot_dimension_numbers<[1], [0], [0], [1], [0, 0, 1, 1], [], []>} : vector<2x128xf32>, vector<128x128xf32>, vector<2x128xf32> -> vector<2x128xf32>
      %c0_24 = arith.constant 0 : index
      %c0_25 = arith.constant 0 : index
      %28 = vector.load %arg7[%c0_24, %c0_25] : memref<1x128xf32, #tpu.memory_space<vmem>>, vector<1x128xf32>
      %29 = vector.broadcast %28 : vector<1x128xf32> to vector<2x128xf32>
      %30 = arith.addf %27, %29 : vector<2x128xf32>
      %c0_26 = arith.constant 0 : index
      %c0_27 = arith.constant 0 : index
      %31 = vector.load %arg8[%c0_26, %c0_27] : memref<2x128xf32, #tpu.memory_space<vmem>>, vector<2x128xf32>
      tpu.vector_store %arg8[%c0_26, %c0_27], %30 {strides = array<i32>} : memref<2x128xf32, #tpu.memory_space<vmem>>, vector<2x128xf32>,
    } else {
    }
    return
  }
  func.func @transform_0(%arg0: i32, %arg1: i32) -> (i32, i32, i32) {
    %c0_i32 = arith.constant 0 : i32
    %c0_i32_0 = arith.constant 0 : i32
    return %arg0, %arg1, %c0_i32 : i32, i32, i32
  }
  func.func @transform_1(%arg0: i32, %arg1: i32) -> (i32, i32, i32) {
    %c0_i32 = arith.constant 0 : i32
    %c0_i32_0 = arith.constant 0 : i32
    return %arg0, %arg1, %c0_i32 : i32, i32, i32
  }
  func.func @transform_2(%arg0: i32, %arg1: i32) -> (i32, i32) {
    %c0_i32 = arith.constant 0 : i32
    %c0_i32_0 = arith.constant 0 : i32
    %c0_i32_1 = arith.constant 0 : i32
    return %c0_i32, %c0_i32_0 : i32, i32
  }
  func.func @transform_3(%arg0: i32, %arg1: i32) -> (i32, i32) {
    %c0_i32 = arith.constant 0 : i32
    %c0_i32_0 = arith.constant 0 : i32
    %c0_i32_1 = arith.constant 0 : i32
    return %c0_i32, %c0_i32_0 : i32, i32
  }
  func.func @transform_4(%arg0: i32, %arg1: i32) -> (i32, i32) {
    %c0_i32 = arith.constant 0 : i32
    %c0_i32_0 = arith.constant 0 : i32
    %c0_i32_1 = arith.constant 0 : i32
    return %c0_i32, %c0_i32_0 : i32, i32
  }
  func.func @transform_5(%arg0: i32, %arg1: i32) -> (i32, i32) {
    %c0_i32 = arith.constant 0 : i32
    %c0_i32_0 = arith.constant 0 : i32
    %c0_i32_1 = arith.constant 0 : i32
    return %c0_i32, %c0_i32_0 : i32, i32
  }
  func.func @transform_6(%arg0: i32, %arg1: i32) -> (i32, i32) {
    %c0_i32 = arith.constant 0 : i32
    %c0_i32_0 = arith.constant 0 : i32
    return %arg0, %c0_i32 : i32, i32
  }
}

</mosaic_0001>

<bundles_post_ra>
// kernel: tpu_custom_call.1
= control target key start
LH: loop header
LB: loop body
LE: loop exit
PB: predicated region body
PF: predicated region fallthrough
CT: control target
= control target key end

     0   :  { %11 = vsyncpa [#allocation4], 0  ;;  %s659_s0 = inlined_call_operand.vmem [shape: f32[2,8,128], index: 0, kind: input, shape index: {}]   ;;  %s660_s1 = inlined_call_operand.vmem [shape: f32[2,8,1], index: 1, kind: input, shape index: {}]   ;;  %s661_s2 = inlined_call_operand.hbm [shape: f32[128,128], index: 2, kind: input, shape index: {}]   ;;  %s662_s3 = inlined_call_operand.vmem [shape: f32[1,128], index: 3, kind: input, shape index: {}]   ;;  %s663_s4 = inlined_call_operand.hbm [shape: f32[128,128], index: 4, kind: input, shape index: {}]   ;;  %s664_s5 = inlined_call_operand.vmem [shape: f32[1,128], index: 5, kind: input, shape index: {}]   ;;  %s665_s6 = inlined_call_operand.hbm [shape: f32[2,128], index: 6, kind: output, shape index: {}]  }
   0x1   :  { %12 = vsyncpa [#allocation7], 0 }
   0x2   :  { %13 = vsyncpa [#allocation5], 0  ;;  %s553_s21 = smov [#allocation3]   ;;  %s481_s25 = scalar_lea.hbm %s661_s2, 2048 }
   0x3   :  { %s23_s22 = sshll.u32 %s553_s21, 4  ;;  %p482_p0 = scmp.ne.s32.totalorder %s661_s2, %s481_s25  ;;  %s24_s22 = int_to_ptr.vmem [resolvable:$true] %s23_s22 }
   0x4   :  { %p485_p1 = scmp.lt.u32.totalorder %s481_s25, %s661_s2 }
   0x6   :  { %p487_p2 = pnand %p485_p1, %p482_p0 }
   0x8   :  { %490 = shalt.err (!%p487_p2)
}
   0x9   :  { %s491_s30 = scalar_lea.vmem %s24_s22, 2048  ;;  %p496_p4 = scmp.lt.s32.totalorder %s24_s22, %s24_s22 }
   0xa   :  { %p492_p3 = scmp.ne.s32.totalorder %s24_s22, %s491_s30  ;;  %p497_p5 = scmp.lt.s32.totalorder %s491_s30, %s491_s30 }
   0xc   :  { %p498_p6 = por %p497_p5, %p496_p4 }
   0xe   :  { %p499_p7 = pnand %p498_p6, %p492_p3 }
  0x10   :  { %502 = shalt.err (!%p499_p7)
}
  0x11   :  { %s554_s7 = smov 128   ;;  %s555_s8 = smov 8  }
  0x12   :  { %29 = dma.hbm_to_vmem [thread:$0]  %s661_s2, 2048, %s24_s22, [#allocation4], %s554_s7, %s554_s7, %s555_s8  }
  0x13   :  { %s556_s11 = smov [#allocation6]   ;;  %s503_s15 = scalar_lea.hbm %s663_s4, 2048 }
  0x14   :  { %s37_s12 = sshll.u32 %s556_s11, 4  ;;  %p504_p8 = scmp.ne.s32.totalorder %s663_s4, %s503_s15  ;;  %s38_s12 = int_to_ptr.vmem [resolvable:$true] %s37_s12 }
  0x15   :  { %p507_p9 = scmp.lt.u32.totalorder %s503_s15, %s663_s4 }
  0x17   :  { %p509_p10 = pnand %p507_p9, %p504_p8 }
  0x19   :  { %512 = shalt.err (!%p509_p10)
}
  0x1a   :  { %s513_s20 = scalar_lea.vmem %s38_s12, 2048  ;;  %p518_p12 = scmp.lt.s32.totalorder %s38_s12, %s38_s12 }
  0x1b   :  { %p514_p11 = scmp.ne.s32.totalorder %s38_s12, %s513_s20  ;;  %p519_p13 = scmp.lt.s32.totalorder %s513_s20, %s513_s20 }
  0x1d   :  { %p520_p0 = por %p519_p13, %p518_p12 }
  0x1f   :  { %p521_p1 = pnand %p520_p0, %p514_p11 }
  0x21   :  { %524 = shalt.err (!%p521_p1)
}
  0x22   :  { %43 = dma.hbm_to_vmem [thread:$0]  %s663_s4, 2048, %s38_s12, [#allocation7], %s554_s7, %s554_s7, %s555_s8  }
  0x23   :  { %547 = dma.done.wait [#allocation4], 2048  }
  0x24   :  { %548 = vsyncadd [#allocation4], 4294965248 }
  0x25   :  { %549 = dma.done.wait [#allocation7], 2048  }
  0x26   :  { %550 = vsyncadd [#allocation7], 4294965248  ;;  %v557_v0 = vmov 0   ;;  %v59_v1 = vld [vmem:[%s660_s1] sm:$0xff]  ;;  %v74_v3 = vld [vmem:[#allocation3 + $0x8] sm:$0xff]  ;;  %v558_v14 = vmov 0.0|0.0  }
  0x27   :  { %480 = vset.pattern.permute.xlu0 %v557_v0  ;;  %v73_v2 = vld [vmem:[#allocation3] sm:$0xff]  ;;  %v75_v4 = vld [vmem:[#allocation3 + $0x10] sm:$0xff]  ;;  %v76_v5 = vld [vmem:[#allocation3 + $0x18] sm:$0xff]  ;;  %447 = vmatprep.subr.bf16.mxu1 %v558_v14  ;;  %v559_v46 = vmov 0.0   ;;  %vm560_vm0 = vmmov 0   ;;  %vm188_vm1 = vcmask 1041409  }
  0x28   :  { %63 = vperm.xlu0 %480, %v59_v1   ;;  %v60_v6 = vld [vmem:[%s660_s1 + $0x8] sm:$0xff]  ;;  %v415_v7 = vpack.c.bf16 %v74_v3, %v73_v2  ;;  %v419_v8 = vpack.c.bf16 %v76_v5, %v75_v4  ;;  %v79_v12 = vld [vmem:[#allocation3 + $0x30] sm:$0xff]  ;;  %v80_v13 = vld [vmem:[#allocation3 + $0x38] sm:$0xff]  ;;  %56 = vst [vmem:[#allocation2] sm:$0x3] %v559_v46  ;;  %412 = vmatprep.mubr.msk.f32.mxu1 %vm560_vm0, %v559_v46  ;;  %s561_s30 = smov [#allocation8]  }
  0x29   :  { %v77_v9 = vld [vmem:[#allocation3 + $0x20] sm:$0xff]  ;;  %v78_v10 = vld [vmem:[#allocation3 + $0x28] sm:$0xff]  ;;  %v427_v15 = vpack.c.bf16 %v80_v13, %v79_v12  ;;  %v83_v19 = vld [vmem:[#allocation3 + $0x50] sm:$0xff]  ;;  %s298_s7 = sshll.u32 %s561_s30, 4  ;;  %s299_s7 = int_to_ptr.vmem [resolvable:$true] %s298_s7 }
  0x2a   :  { %416 = vmatprep.subr.bf16.mxu0 %v415_v7  ;;  %v423_v11 = vpack.c.bf16 %v78_v10, %v77_v9  ;;  %v81_v16 = vld [vmem:[#allocation3 + $0x40] sm:$0xff]  ;;  %v82_v17 = vld [vmem:[#allocation3 + $0x48] sm:$0xff]  ;;  %v84_v20 = vld [vmem:[#allocation3 + $0x58] sm:$0xff]  ;;  %s525_s8 = scalar_lea.vmem %s299_s7, 32  ;;  %p530_p3 = scmp.lt.s32.totalorder %s299_s7, %s299_s7 }
  0x2b   :  { %418 = vmatpush3.bf16.msra.mxu0 %v415_v7  ;;  %v431_v18 = vpack.c.bf16 %v82_v17, %v81_v16  ;;  %v435_v21 = vpack.c.bf16 %v84_v20, %v83_v19  ;;  %v85_v22 = vld [vmem:[#allocation3 + $0x60] sm:$0xff]  ;;  %v86_v23 = vld [vmem:[#allocation3 + $0x68] sm:$0xff]  ;;  %v87_v25 = vld [vmem:[#allocation3 + $0x70] sm:$0xff]  ;;  %p526_p2 = scmp.ne.s32.totalorder %s299_s7, %s525_s8  ;;  %p531_p4 = scmp.lt.s32.totalorder %s525_s8, %s525_s8 }
  0x2c   :  { %68 = vperm.xlu0 %480, %v60_v6   ;;  %420 = vmatprep.subr.bf16.mxu0 %v419_v8  ;;  %v439_v24 = vpack.c.bf16 %v86_v23, %v85_v22  ;;  %v88_v26 = vld [vmem:[#allocation3 + $0x78] sm:$0xff]  ;;  %v58_v31 = vld [vmem:[%s659_s0 + $0x8] sm:$0xff]  ;;  %v200_v37 = vld [vmem:[#allocation6 + $0x10] sm:$0xff] }
  0x2d   :  { %v443_v27 = vpack.c.bf16 %v88_v26, %v87_v25  ;;  %v57_v28 = vld [vmem:[%s659_s0] sm:$0xff]  ;;  %v199_v35 = vld [vmem:[#allocation6 + $0x8] sm:$0xff]  ;;  %v204_v43 = vld [vmem:[#allocation6 + $0x30] sm:$0xff]  ;;  %p532_p5 = por %p531_p4, %p530_p3 }
  0x2e   :  { %v198_v34 = vld [vmem:[#allocation6] sm:$0xff]  ;;  %v201_v38 = vld [vmem:[#allocation6 + $0x18] sm:$0xff]  ;;  %v203_v41 = vld [vmem:[#allocation6 + $0x28] sm:$0xff] }
  0x2f   :  { %422 = vmatpush3.bf16.msra.mxu0 %v419_v8  ;;  %v448_v36 = vpack.c.bf16 %v199_v35, %v198_v34  ;;  %v451_v39 = vpack.c.bf16 %v201_v38, %v200_v37  ;;  %v202_v40 = vld [vmem:[#allocation6 + $0x20] sm:$0xff]  ;;  %v205_v44 = vld [vmem:[#allocation6 + $0x38] sm:$0xff]  ;;  %v207_v48 = vld [vmem:[#allocation6 + $0x48] sm:$0xff]  ;;  %p533_p6 = pnand %p532_p5, %p526_p2 }
  0x30   :  { %424 = vmatprep.subr.bf16.mxu0 %v423_v11  ;;  %v454_v42 = vpack.c.bf16 %v203_v41, %v202_v40  ;;  %v457_v45 = vpack.c.bf16 %v205_v44, %v204_v43  ;;  %v206_v47 = vld [vmem:[#allocation6 + $0x40] sm:$0xff]  ;;  %v208_v50 = vld [vmem:[#allocation6 + $0x50] sm:$0xff]  ;;  %v209_v51 = vld [vmem:[#allocation6 + $0x58] sm:$0xff] }
  0x31   :  { %449 = vmatpush3.bf16.msra.mxu1 %v448_v36  ;;  %v460_v49 = vpack.c.bf16 %v207_v48, %v206_v47  ;;  %v463_v52 = vpack.c.bf16 %v209_v51, %v208_v50  ;;  %v210_v53 = vld [vmem:[#allocation6 + $0x60] sm:$0xff]  ;;  %v211_v54 = vld [vmem:[#allocation6 + $0x68] sm:$0xff]  ;;  %v212_v56 = vld [vmem:[#allocation6 + $0x70] sm:$0xff] }
  0x32   :  { %450 = vmatprep.subr.bf16.mxu1 %v558_v14  ;;  %v466_v55 = vpack.c.bf16 %v211_v54, %v210_v53  ;;  %v213_v57 = vld [vmem:[#allocation6 + $0x78] sm:$0xff] }
  0x33   :  { %426 = vmatpush3.bf16.msra.mxu0 %v423_v11  ;;  %v469_v58 = vpack.c.bf16 %v213_v57, %v212_v56  ;;  %v308_v59 = vld [vmem:[%s662_s3] ss:$0 sm:$0xff] }
  0x34   :  { %428 = vmatprep.subr.bf16.mxu0 %v427_v15  ;;  %v309_v19 = vld [vmem:[%s664_s5] ss:$0 sm:$0xff] }
  0x35   :  { %452 = vmatpush3.bf16.msra.mxu1 %v451_v39 }
  0x36   :  { %453 = vmatprep.subr.bf16.mxu1 %v558_v14 }
  0x37   :  { %430 = vmatpush3.bf16.msra.mxu0 %v427_v15 }
  0x38   :  { %432 = vmatprep.subr.bf16.mxu0 %v431_v18 }
  0x39   :  { %455 = vmatpush3.bf16.msra.mxu1 %v454_v42 }
  0x3a   :  { %456 = vmatprep.subr.bf16.mxu1 %v558_v14 }
  0x3b   :  { %434 = vmatpush3.bf16.msra.mxu0 %v431_v18 }
  0x3c   :  { %436 = vmatprep.subr.bf16.mxu0 %v435_v21 }
  0x3d   :  { %458 = vmatpush3.bf16.msra.mxu1 %v457_v45 }
  0x3e   :  { %459 = vmatprep.subr.bf16.mxu1 %v558_v14 }
  0x3f   :  { %438 = vmatpush3.bf16.msra.mxu0 %v435_v21 }
  0x40   :  { %440 = vmatprep.subr.bf16.mxu0 %v439_v24 }
  0x41   :  { %461 = vmatpush3.bf16.msra.mxu1 %v460_v49 }
  0x42   :  { %462 = vmatprep.subr.bf16.mxu1 %v558_v14 }
  0x43   :  { %442 = vmatpush3.bf16.msra.mxu0 %v439_v24 }
  0x44   :  { %444 = vmatprep.subr.bf16.mxu0 %v443_v27 }
  0x45   :  { %464 = vmatpush3.bf16.msra.mxu1 %v463_v52 }
  0x46   :  { %465 = vmatprep.subr.bf16.mxu1 %v558_v14 }
  0x47   :  { %446 = vmatpush3.bf16.msra.mxu0 %v443_v27 }
  0x49   :  { %467 = vmatpush3.bf16.msra.mxu1 %v466_v55 }
  0x4a   :  { %468 = vmatprep.subr.bf16.mxu1 %v558_v14  ;;  %v173_v14 = vld [vmem:[#allocation2] sm:$0x3] }
  0x4d   :  { %470 = vmatpush3.bf16.msra.mxu1 %v469_v58 }
  0xa7   :  { %v64_v29 = vpop.permute.xlu0 %63 }
  0xa8   :  { %v71_v30 = vmul.f32 %v64_v29, %v57_v28 }
  0xaa   :  { %377 = vmatprep.mubr.f32.mxu0 %v71_v30 }
  0xab   :  { %v69_v32 = vpop.permute.xlu0 %68 }
  0xac   :  { %v72_v33 = vmul.f32 %v69_v32, %v58_v31 }
  0xae   :  { %378 = vmatmul.mubr.f32.vlgmr.msra.gmra.mrb[0].mxu0 %v72_v33 }
 0x181   :  { %v379_v60 = vpop.f32.mrb[0].mxu0 }
 0x182   :  { %v168_v61 = vadd.f32 %v379_v60, %v308_v59  ;;  %v162_v62 = vpop.f32.mrb[1].mxu0 }
 0x183   :  { %v163_v63 = vadd.f32 %v308_v59, %v162_v62 }
 0x184   :  { %v172_v0 = vmax.f32 %v168_v61, 0.0 }
 0x185   :  { %v171_v1 = vmax.f32 %v163_v63, 0.0 }
 0x186   :  { %v180_v2 = vrot.slane %v172_v0, 4 }
 0x187   :  { %v174_v3 = vrot.slane %v171_v1, 4 }
 0x188   :  { %v181_v4 = vadd.f32 %v180_v2, %v172_v0 }
 0x189   :  { %v175_v5 = vadd.f32 %v174_v3, %v171_v1 }
 0x18a   :  { %v182_v6 = vrot.slane %v181_v4, 2 }
 0x18b   :  { %v176_v7 = vrot.slane %v175_v5, 2 }
 0x18c   :  { %v183_v8 = vadd.f32 %v182_v6, %v181_v4 }
 0x18d   :  { %v177_v9 = vadd.f32 %v176_v7, %v175_v5 }
 0x18e   :  { %v184_v10 = vrot.slane %v183_v8, 1 }
 0x18f   :  { %v178_v11 = vrot.slane %v177_v9, 1 }
 0x190   :  { %v185_v12 = vadd.f32 %v184_v10, %v183_v8 }
 0x191   :  { %v179_v13 = vadd.f32 %v178_v11, %v177_v9 }
 0x193   :  { %v189_v15 = vsel %vm188_vm1, %v185_v12, %v179_v13 }
 0x194   :  { %v191_v16 = vadd.f32 %v189_v15, %v173_v14 }
 0x196   :  { %192 = vst [vmem:[#allocation2] sm:$0x3] %v191_v16 }
 0x19d   :  { %v196_v17 = vld [vmem:[#allocation2] sm:$0x3] }
 0x19e   :  { %v197_v18 = vmul.f32 0.125, %v196_v17 }
 0x1a0   :  { %413 = vmatmul.mubr.f32.vlgmr.msra.gmra.mrb[0].mxu1 %v197_v18 }
 0x273   :  { %v287_v20 = vpop.f32.mrb[0].mxu1 }
 0x274   :  { %v288_v21 = vadd.f32 %v309_v19, %v287_v20  ;;  %v414_v22 = vpop.f32.mrb[1].mxu1 }
 0x276   :  { %291 = vst [vmem:[#allocation8] sm:$0x3] %v288_v21 }
 0x277   :  { %536 = shalt.err (!%p533_p6)
}
 0x278   :  { %s537_s11 = scalar_lea.hbm %s665_s6, 32 }
 0x279   :  { %p538_p7 = scmp.ne.s32.totalorder %s665_s6, %s537_s11  ;;  %p541_p8 = scmp.lt.u32.totalorder %s537_s11, %s665_s6 }
 0x27b   :  { %p543_p9 = pnand %p541_p8, %p538_p7 }
 0x27d   :  { %546 = shalt.err (!%p543_p9)
}
 0x27e   :  { %301 = dma.vmem_to_hbm [thread:$0]  %s299_s7, 32, %s665_s6, [#allocation5]  }
 0x27f   :  { %551 = dma.done.wait [#allocation5], 32  }
 0x280   :  { %552 = vsyncadd [#allocation5], 4294967264 }
 0x281   :  { %305 = vsyncpa [#allocation4], 1 }
 0x282   :  { %306 = vsyncpa [#allocation7], 1 }
 0x283   :  { %307 = vsyncpa [#allocation5], 1 }

</bundles_post_ra>
